<compile_context>
chip_gen: v6e
topology: v6e:2x2x1
jax: 0.10.0
libtpu: 0.0.40
codegen_flags: <defaults>
</compile_context>

<pallas_src>
import jax
import jax.numpy as jnp
from jax import lax
from jax.experimental import pallas as pl
from jax.experimental.pallas import tpu as pltpu


def _attention_kernel(x_ref, wq_ref, wk_ref, wv_ref, wproj_ref, bproj_ref,
                      o_ref, acc_ref):
    # Grid is (B, H); H is the reduction axis (output block revisited across it).
    h = pl.program_id(1)

    x = x_ref[0]          # (N, C)   bf16
    wq = wq_ref[0]        # (C, Dh)  bf16, softmax scale already folded in
    wk = wk_ref[0]        # (C, Dh)  bf16
    wv = wv_ref[0]        # (C, Dh)  bf16
    wp = wproj_ref[0]     # (Dh, C)  bf16

    # Per-head projections (MXU, bf16 operands, f32 accumulation).
    q = jnp.dot(x, wq, preferred_element_type=jnp.float32).astype(jnp.bfloat16)
    k = jnp.dot(x, wk, preferred_element_type=jnp.float32).astype(jnp.bfloat16)
    v = jnp.dot(x, wv, preferred_element_type=jnp.float32).astype(jnp.bfloat16)

    # Scores: contract the head dim of q and k directly -- no explicit k.T.
    s = lax.dot_general(q, k, (((1,), (1,)), ((), ())),
                        preferred_element_type=jnp.float32)          # (N, N) f32

    # Softmax (f32); normalization deferred to after the PV matmul.
    m = jnp.max(s, axis=-1, keepdims=True)
    p = jnp.exp(s - m)
    l = jnp.sum(p, axis=-1, keepdims=True)

    o_h = jnp.dot(p.astype(jnp.bfloat16), v,
                  preferred_element_type=jnp.float32)                # (N, Dh) f32
    o_h = o_h * pl.reciprocal(l, approx=True)                        # (N, Dh)

    # Per-head contribution to the output projection: (N, Dh) @ (Dh, C) -> (N, C).
    partial = jnp.dot(o_h.astype(jnp.bfloat16), wp,
                      preferred_element_type=jnp.float32)            # (N, C) f32

    @pl.when(h == 0)
    def _():
        acc_ref[...] = jnp.zeros_like(acc_ref)

    acc_ref[...] += partial

    @pl.when(h == pl.num_programs(1) - 1)
    def _():
        o_ref[0] = (acc_ref[...] + bproj_ref[...]).astype(o_ref.dtype)


def attention_pallas(x, w_qkv, w_proj, b_proj, *, num_heads):
    B, N, C = x.shape
    assert C % num_heads == 0
    H = num_heads
    Dh = C // H
    scale = Dh ** (-0.5)

    # ---- Wrapper-side weight re-layout (head-major, pre-transposed). ----
    # torch: qkv = x @ W_qkv.T, reshape(B,N,3,H,Dh) => q_h[n,d] = sum_c x[n,c]*W_qkv[h*Dh+d, c]
    wq = w_qkv[0 * C:1 * C].reshape(H, Dh, C).transpose(0, 2, 1) * scale  # (H, C, Dh)
    wk = w_qkv[1 * C:2 * C].reshape(H, Dh, C).transpose(0, 2, 1)          # (H, C, Dh)
    wv = w_qkv[2 * C:3 * C].reshape(H, Dh, C).transpose(0, 2, 1)          # (H, C, Dh)
    # proj: y = out @ W_proj.T + b  =>  per-head (Dh, C) slabs of W_proj.T
    wp = w_proj.T.reshape(H, Dh, C)                                       # (H, Dh, C)

    compute_dtype = jnp.bfloat16
    xc = x.astype(compute_dtype)
    wq = wq.astype(compute_dtype)
    wk = wk.astype(compute_dtype)
    wv = wv.astype(compute_dtype)
    wp = wp.astype(compute_dtype)
    b2 = b_proj.reshape(1, C).astype(jnp.float32)

    return pl.pallas_call(
        _attention_kernel,
        out_shape=jax.ShapeDtypeStruct((B, N, C), x.dtype),
        grid_spec=pltpu.PrefetchScalarGridSpec(
            num_scalar_prefetch=0,
            grid=(B, H),                                   # reduction axis (H) last
            in_specs=[
                pl.BlockSpec((1, N, C), lambda b, h: (b, 0, 0)),    # x (one batch)
                pl.BlockSpec((1, C, Dh), lambda b, h: (h, 0, 0)),   # wq head h
                pl.BlockSpec((1, C, Dh), lambda b, h: (h, 0, 0)),   # wk head h
                pl.BlockSpec((1, C, Dh), lambda b, h: (h, 0, 0)),   # wv head h
                pl.BlockSpec((1, Dh, C), lambda b, h: (h, 0, 0)),   # wproj head h
                pl.BlockSpec((1, C), lambda b, h: (0, 0)),          # proj bias
            ],
            out_specs=pl.BlockSpec((1, N, C), lambda b, h: (b, 0, 0)),
            scratch_shapes=[pltpu.VMEM((N, C), jnp.float32)],       # output accumulator
        ),
        compiler_params=pltpu.CompilerParams(
            dimension_semantics=("parallel", "arbitrary")),
    )(xc, wq, wk, wv, wp, b2)


def attention_reference(x, w_qkv, w_proj, b_proj, *, num_heads):
    """Plain-JAX (f32) mirror of the PyTorch forward (eval mode)."""
    B, N, C = x.shape
    head_dim = C // num_heads
    scale = head_dim ** (-0.5)
    qkv = jnp.einsum('bnc,dc->bnd', x, w_qkv)                 # (B, N, 3C)
    qkv = qkv.reshape(B, N, 3, num_heads, head_dim).transpose(2, 0, 3, 1, 4)
    q, k, v = qkv[0], qkv[1], qkv[2]                           # (B, H, N, Dh)
    attn = jnp.einsum('bhnd,bhmd->bhnm', q, k) * scale
    attn = jax.nn.softmax(attn, axis=-1)
    out = jnp.einsum('bhnm,bhmd->bhnd', attn, v)               # (B, H, N, Dh)
    out = out.transpose(0, 2, 1, 3).reshape(B, N, C)
    return jnp.einsum('bnc,dc->bnd', out, w_proj) + b_proj


if __name__ == "__main__":
    # Small shapes consistent with the module: B=2, N=8 tokens, C=32 dims, 8 heads.
    B, N, C, H = 2, 8, 32, 8

    key = jax.random.PRNGKey(0)
    kx, kqkv, kp, kb = jax.random.split(key, 4)

    x = jax.random.normal(kx, (B, N, C), dtype=jnp.float32)
    w_qkv = jax.random.normal(kqkv, (3 * C, C), dtype=jnp.float32) * 0.05
    w_proj = jax.random.normal(kp, (C, C), dtype=jnp.float32) * 0.05
    b_proj = jax.random.normal(kb, (C,), dtype=jnp.float32) * 0.01

    out = attention_pallas(x, w_qkv, w_proj, b_proj, num_heads=H)
    out = jax.block_until_ready(out)

    ref = attention_reference(x, w_qkv, w_proj, b_proj, num_heads=H)
    assert out.shape == (B, N, C)
    # bf16 MXU operands + approx reciprocal -> tolerance loosened vs. the f32 ref.
    assert jnp.allclose(out, ref, atol=2e-2, rtol=2e-2), "mismatch vs reference"

    print("KERNEL_OK")
</pallas_src>

<mosaic_0001>
module attributes {stable_mosaic.version = 11 : i64} {
  func.func @_attention_kernel(%arg0: i32, %arg1: i32, %arg2: memref<1x8x32xbf16, #tpu.memory_space<vmem>>, %arg3: memref<1x32x4xbf16, #tpu.memory_space<vmem>>, %arg4: memref<1x32x4xbf16, #tpu.memory_space<vmem>>, %arg5: memref<1x32x4xbf16, #tpu.memory_space<vmem>>, %arg6: memref<1x4x32xbf16, #tpu.memory_space<vmem>>, %arg7: memref<1x32xf32, #tpu.memory_space<vmem>>, %arg8: memref<1x8x32xf32, #tpu.memory_space<vmem>>, %arg9: memref<8x32xf32, #tpu.memory_space<vmem>>) attributes {dimension_semantics = [#tpu.dimension_semantics<parallel>, #tpu.dimension_semantics<arbitrary>], iteration_bounds = array<i64: 2, 8>, scalar_prefetch = 0 : i64, scratch_operands = 1 : i64, tpu.core_type = #tpu.core_type<tc>, window_params = [{transform_indices = @transform_0, window_bounds = array<i64: 1, 8, 32>}, {transform_indices = @transform_1, window_bounds = array<i64: 1, 32, 4>}, {transform_indices = @transform_2, window_bounds = array<i64: 1, 32, 4>}, {transform_indices = @transform_3, window_bounds = array<i64: 1, 32, 4>}, {transform_indices = @transform_4, window_bounds = array<i64: 1, 4, 32>}, {pipeline_mode = #tpu.pipeline_mode<synchronous>, transform_indices = @transform_5, window_bounds = array<i64: 1, 32>}, {transform_indices = @transform_6, window_bounds = array<i64: 1, 8, 32>}]} {
    %c0 = arith.constant 0 : index
    %c0_0 = arith.constant 0 : index
    %c0_1 = arith.constant 0 : index
    %0 = vector.load %arg2[%c0, %c0_0, %c0_1] : memref<1x8x32xbf16, #tpu.memory_space<vmem>>, vector<1x8x32xbf16>
    %1 = vector.shape_cast %0 : vector<1x8x32xbf16> to vector<8x32xbf16>
    %c0_2 = arith.constant 0 : index
    %c0_3 = arith.constant 0 : index
    %c0_4 = arith.constant 0 : index
    %2 = vector.load %arg3[%c0_2, %c0_3, %c0_4] : memref<1x32x4xbf16, #tpu.memory_space<vmem>>, vector<1x32x4xbf16>
    %3 = vector.shape_cast %2 : vector<1x32x4xbf16> to vector<32x4xbf16>
    %c0_5 = arith.constant 0 : index
    %c0_6 = arith.constant 0 : index
    %c0_7 = arith.constant 0 : index
    %4 = vector.load %arg4[%c0_5, %c0_6, %c0_7] : memref<1x32x4xbf16, #tpu.memory_space<vmem>>, vector<1x32x4xbf16>
    %5 = vector.shape_cast %4 : vector<1x32x4xbf16> to vector<32x4xbf16>
    %c0_8 = arith.constant 0 : index
    %c0_9 = arith.constant 0 : index
    %c0_10 = arith.constant 0 : index
    %6 = vector.load %arg5[%c0_8, %c0_9, %c0_10] : memref<1x32x4xbf16, #tpu.memory_space<vmem>>, vector<1x32x4xbf16>
    %7 = vector.shape_cast %6 : vector<1x32x4xbf16> to vector<32x4xbf16>
    %c0_11 = arith.constant 0 : index
    %c0_12 = arith.constant 0 : index
    %c0_13 = arith.constant 0 : index
    %8 = vector.load %arg6[%c0_11, %c0_12, %c0_13] : memref<1x4x32xbf16, #tpu.memory_space<vmem>>, vector<1x4x32xbf16>
    %9 = vector.shape_cast %8 : vector<1x4x32xbf16> to vector<4x32xbf16>
    %cst = arith.constant dense<0.000000e+00> : vector<8x4xf32>
    %10 = tpu.matmul %1, %3, %cst {dimension_numbers = #tpu.dot_dimension_numbers<[1], [0], [0], [1], [0, 0, 1, 1], [], []>} : vector<8x32xbf16>, vector<32x4xbf16>, vector<8x4xf32> -> vector<8x4xf32>
    %11 = arith.truncf %10 : vector<8x4xf32> to vector<8x4xbf16>
    %cst_14 = arith.constant dense<0.000000e+00> : vector<8x4xf32>
    %12 = tpu.matmul %1, %5, %cst_14 {dimension_numbers = #tpu.dot_dimension_numbers<[1], [0], [0], [1], [0, 0, 1, 1], [], []>} : vector<8x32xbf16>, vector<32x4xbf16>, vector<8x4xf32> -> vector<8x4xf32>
    %13 = arith.truncf %12 : vector<8x4xf32> to vector<8x4xbf16>
    %cst_15 = arith.constant dense<0.000000e+00> : vector<8x4xf32>
    %14 = tpu.matmul %1, %7, %cst_15 {dimension_numbers = #tpu.dot_dimension_numbers<[1], [0], [0], [1], [0, 0, 1, 1], [], []>} : vector<8x32xbf16>, vector<32x4xbf16>, vector<8x4xf32> -> vector<8x4xf32>
    %15 = arith.truncf %14 : vector<8x4xf32> to vector<8x4xbf16>
    %cst_16 = arith.constant dense<0.000000e+00> : vector<8x8xf32>
    %16 = tpu.matmul %11, %13, %cst_16 {dimension_numbers = #tpu.dot_dimension_numbers<[1], [1], [0], [0], [0, 0, 1, 0], [], []>} : vector<8x4xbf16>, vector<8x4xbf16>, vector<8x8xf32> -> vector<8x8xf32>
    %cst_17 = arith.constant dense<0xFF800000> : vector<8xf32>
    %17 = vector.multi_reduction <maximumf>, %16, %cst_17 [1] : vector<8x8xf32> to vector<8xf32>
    %18 = vector.shape_cast %17 : vector<8xf32> to vector<8x1xf32>
    %19 = vector.broadcast %18 : vector<8x1xf32> to vector<8x8xf32>
    %20 = arith.subf %16, %19 : vector<8x8xf32>
    %21 = math.exp %20 : vector<8x8xf32>
    %cst_18 = arith.constant dense<0.000000e+00> : vector<8xf32>
    %22 = vector.multi_reduction <add>, %21, %cst_18 [1] : vector<8x8xf32> to vector<8xf32>
    %23 = vector.shape_cast %22 : vector<8xf32> to vector<8x1xf32>
    %24 = arith.truncf %21 : vector<8x8xf32> to vector<8x8xbf16>
    %cst_19 = arith.constant dense<0.000000e+00> : vector<8x4xf32>
    %25 = tpu.matmul %24, %15, %cst_19 {dimension_numbers = #tpu.dot_dimension_numbers<[1], [0], [0], [1], [0, 0, 1, 1], [], []>} : vector<8x8xbf16>, vector<8x4xbf16>, vector<8x4xf32> -> vector<8x4xf32>
    %26 = tpu.reciprocal %23 {approx = true} : vector<8x1xf32> -> vector<8x1xf32>
    %27 = vector.broadcast %26 : vector<8x1xf32> to vector<8x4xf32>
    %28 = arith.mulf %25, %27 : vector<8x4xf32>
    %29 = arith.truncf %28 : vector<8x4xf32> to vector<8x4xbf16>
    %cst_20 = arith.constant dense<0.000000e+00> : vector<8x32xf32>
    %30 = tpu.matmul %29, %9, %cst_20 {dimension_numbers = #tpu.dot_dimension_numbers<[1], [0], [0], [1], [0, 0, 1, 1], [], []>} : vector<8x4xbf16>, vector<4x32xbf16>, vector<8x32xf32> -> vector<8x32xf32>
    %c0_i32 = arith.constant 0 : i32
    %31 = arith.cmpi eq, %arg1, %c0_i32 : i32
    %32 = arith.extui %31 : i1 to i32
    %c0_i32_21 = arith.constant 0 : i32
    %33 = arith.cmpi ne, %32, %c0_i32_21 : i32
    scf.if %33 {
      %cst_27 = arith.constant 0.000000e+00 : f32
      %40 = vector.broadcast %cst_27 : f32 to vector<8x32xf32>
      %c0_28 = arith.constant 0 : index
      %c0_29 = arith.constant 0 : index
      %41 = vector.load %arg9[%c0_28, %c0_29] : memref<8x32xf32, #tpu.memory_space<vmem>>, vector<8x32xf32>
      tpu.vector_store %arg9[%c0_28, %c0_29], %40 {strides = array<i32>} : memref<8x32xf32, #tpu.memory_space<vmem>>, vector<8x32xf32>,
    } else {
    }
    %c0_22 = arith.constant 0 : index
    %c0_23 = arith.constant 0 : index
    %34 = vector.load %arg9[%c0_22, %c0_23] : memref<8x32xf32, #tpu.memory_space<vmem>>, vector<8x32xf32>
    %35 = arith.addf %34, %30 : vector<8x32xf32>
    %c0_24 = arith.constant 0 : index
    %c0_25 = arith.constant 0 : index
    %36 = vector.load %arg9[%c0_24, %c0_25] : memref<8x32xf32, #tpu.memory_space<vmem>>, vector<8x32xf32>
    tpu.vector_store %arg9[%c0_24, %c0_25], %35 {strides = array<i32>} : memref<8x32xf32, #tpu.memory_space<vmem>>, vector<8x32xf32>,
    %c7_i32 = arith.constant 7 : i32
    %37 = arith.cmpi eq, %arg1, %c7_i32 : i32
    %38 = arith.extui %37 : i1 to i32
    %c0_i32_26 = arith.constant 0 : i32
    %39 = arith.cmpi ne, %38, %c0_i32_26 : i32
    scf.if %39 {
      %c0_27 = arith.constant 0 : index
      %c0_28 = arith.constant 0 : index
      %40 = vector.load %arg9[%c0_27, %c0_28] : memref<8x32xf32, #tpu.memory_space<vmem>>, vector<8x32xf32>
      %c0_29 = arith.constant 0 : index
      %c0_30 = arith.constant 0 : index
      %41 = vector.load %arg7[%c0_29, %c0_30] : memref<1x32xf32, #tpu.memory_space<vmem>>, vector<1x32xf32>
      %42 = vector.broadcast %41 : vector<1x32xf32> to vector<8x32xf32>
      %43 = arith.addf %40, %42 : vector<8x32xf32>
      %c0_31 = arith.constant 0 : index
      %c0_32 = arith.constant 0 : index
      %c0_33 = arith.constant 0 : index
      %44 = vector.load %arg8[%c0_31, %c0_32, %c0_33] : memref<1x8x32xf32, #tpu.memory_space<vmem>>, vector<1x8x32xf32>
      %45 = vector.shape_cast %44 : vector<1x8x32xf32> to vector<8x32xf32>
      %46 = vector.shape_cast %43 : vector<8x32xf32> to vector<1x8x32xf32>
      tpu.vector_store %arg8[%c0_31, %c0_32, %c0_33], %46 {strides = array<i32>} : memref<1x8x32xf32, #tpu.memory_space<vmem>>, vector<1x8x32xf32>,
    } else {
    }
    return
  }
  func.func @transform_0(%arg0: i32, %arg1: i32) -> (i32, i32, i32) {
    %c0_i32 = arith.constant 0 : i32
    %c0_i32_0 = arith.constant 0 : i32
    %c0_i32_1 = arith.constant 0 : i32
    return %arg0, %c0_i32, %c0_i32_0 : i32, i32, i32
  }
  func.func @transform_1(%arg0: i32, %arg1: i32) -> (i32, i32, i32) {
    %c0_i32 = arith.constant 0 : i32
    %c0_i32_0 = arith.constant 0 : i32
    %c0_i32_1 = arith.constant 0 : i32
    return %arg1, %c0_i32, %c0_i32_0 : i32, i32, i32
  }
  func.func @transform_2(%arg0: i32, %arg1: i32) -> (i32, i32, i32) {
    %c0_i32 = arith.constant 0 : i32
    %c0_i32_0 = arith.constant 0 : i32
    %c0_i32_1 = arith.constant 0 : i32
    return %arg1, %c0_i32, %c0_i32_0 : i32, i32, i32
  }
  func.func @transform_3(%arg0: i32, %arg1: i32) -> (i32, i32, i32) {
    %c0_i32 = arith.constant 0 : i32
    %c0_i32_0 = arith.constant 0 : i32
    %c0_i32_1 = arith.constant 0 : i32
    return %arg1, %c0_i32, %c0_i32_0 : i32, i32, i32
  }
  func.func @transform_4(%arg0: i32, %arg1: i32) -> (i32, i32, i32) {
    %c0_i32 = arith.constant 0 : i32
    %c0_i32_0 = arith.constant 0 : i32
    %c0_i32_1 = arith.constant 0 : i32
    return %arg1, %c0_i32, %c0_i32_0 : i32, i32, i32
  }
  func.func @transform_5(%arg0: i32, %arg1: i32) -> (i32, i32) {
    %c0_i32 = arith.constant 0 : i32
    %c0_i32_0 = arith.constant 0 : i32
    %c0_i32_1 = arith.constant 0 : i32
    return %c0_i32, %c0_i32_0 : i32, i32
  }
  func.func @transform_6(%arg0: i32, %arg1: i32) -> (i32, i32, i32) {
    %c0_i32 = arith.constant 0 : i32
    %c0_i32_0 = arith.constant 0 : i32
    %c0_i32_1 = arith.constant 0 : i32
    return %arg0, %c0_i32, %c0_i32_0 : i32, i32, i32
  }
}

</mosaic_0001>

<bundles_post_ra>
// kernel: tpu_custom_call.1
= control target key start
LH: loop header
LB: loop body
LE: loop exit
PB: predicated region body
PF: predicated region fallthrough
CT: control target
= control target key end

     0   :  { %s1300_s0 = inlined_call_operand.vmem [shape: bf16[2,8,32], index: 0, kind: input, shape index: {}]   ;;  %s1301_s1 = inlined_call_operand.vmem [shape: bf16[8,32,4], index: 1, kind: input, shape index: {}]   ;;  %s1302_s2 = inlined_call_operand.vmem [shape: bf16[8,32,4], index: 2, kind: input, shape index: {}]   ;;  %s1303_s3 = inlined_call_operand.vmem [shape: bf16[8,32,4], index: 3, kind: input, shape index: {}]   ;;  %s1304_s4 = inlined_call_operand.vmem [shape: bf16[8,4,32], index: 4, kind: input, shape index: {}]   ;;  %s1305_s5 = inlined_call_operand.vmem [shape: f32[1,32], index: 5, kind: input, shape index: {}]   ;;  %s1306_s6 = inlined_call_operand.hbm [shape: f32[2,8,32], index: 6, kind: output, shape index: {}]  }
   0x1   :  { %1310 = sst [smem:[#allocation9_spill]] %s1302_s2 }
   0x2   :  { %11 = vsyncpa [#allocation4], 0 }
   0x3   :  { %13 = vsyncpa [#allocation4 + $0x1], 0  ;;  %s1133_s21 = smov 0   ;;  %s1135_s22 = smov 0  }
   0x4   :  { %s1137_s23 = smov 0   ;;  %s1139_s24 = smov 0  }
   0x5   :  { %s1141_s25 = smov 0   ;;  %s1143_s26 = smov 0  }
   0x6   :  { %s1145_s27 = smov 0   ;;  %s1147_s28 = smov 0  }
   0x7 LB: > { %1311 = sst [smem:[#allocation6_spill]] %s1088_s27  ;;  %s823_s29 = sadd.s32 4294967295, %s1092_s28   ;;  %s1092_s28 = sphi %s1147_s28, %s19_s28   ;;  %s1088_s27 = sphi %s1145_s27, %s1320_s27   ;;  %s1084_s26 = sphi %s1143_s26, %s1325_s26   ;;  %s1080_s25 = sphi %s1141_s25, %s1318_s25   ;;  %s1076_s24 = sphi %s1139_s24, %s1324_s24   ;;  %s1072_s23 = sphi %s1137_s23, %s1323_s23   ;;  %s1068_s22 = sphi %s1135_s22, %s1322_s22   ;;  %s1064_s21 = sphi %s1133_s21, %s1321_s21  }
   0x8   : > { %s824_s30 = sadd.s32 4294967294, %s1092_s28   ;;  %s28_s7 = sadd.s32 1, %s1084_s26 }
   0x9   : > { %p29_p0 = scmp.ge.s32.totalorder %s28_s7, 8  ;;  %s31_s8 = sadd.s32 1, %s1088_s27 }
   0xa   : > { %p199_p1 = scmp.ne.s32.totalorder %s1072_s23, %s1068_s22  ;;  %p200_p2 = scmp.eq.s32.totalorder %s823_s29, 15 }
   0xb   : > { %s1327_s7 = smov (%p29_p0, %s28_s7), 0  ;;  %s1329_s8 = smov (!%p29_p0, %s31_s8), %s1088_s27 }
   0xc   : > { %1312 = sst [smem:[#allocation7_spill]] %s1327_s7  ;;  %p1182_p3 = por %p200_p2, %p199_p1 }
   0xd   : > { %p205_p4 = scmp.ne.s32.totalorder %s1068_s22, %s1064_s21  ;;  %p33_p5 = scmp.ge.s32.totalorder %s1329_s8, 2 }
   0xe   : > { %p206_p6 = scmp.eq.s32.totalorder %s824_s30, 15  ;;  %p827_p7 = scmp.ge.s32.totalorder %s1092_s28, 1 }
   0xf   : > { %p265_p8 = scmp.lt.s32.totalorder %s1092_s28, 17  ;;  %s1331_s8 = smov (%p33_p5, %s1329_s8), 0 }
  0x10   : > { %1314 = sst [smem:[#allocation8_spill]] %s1331_s8  ;;  %p1192_p9 = por %p206_p6, %p205_p4 }
  0x11   : > { %p266_p10 = pnand %p827_p7, %p265_p8  ;;  %s186_s11 = ssub.s32 %s1088_s27, %s1331_s8 }
  0x12   : > { %s189_s12 = sadd.s32 1, %s1072_s23  ;;  %p187_p11 = scmp.eq.s32.totalorder %s186_s11, 0 }
  0x13   : > { %269 = sbr.rel (%p266_p10) target bundleno = 1034 (0x40a), region = 44  ;;  %p317_p12 = scmp.lt.s32.totalorder (!%p266_p10), %s1076_s24, 7 }
  0x14   : > { %s1200_s13 = scalar_select %p187_p11, %s1072_s23, %s189_s12  }
  0x15   : > { %s1307_s14 = sand.u32 (!%p266_p10), 1, %s1068_s22   ;;  %p313_p13 = scmp.lt.s32.totalorder (!%p266_p10), %s1080_s25, 1 }
  0x16   : > { %s1206_s15 = sshll.u32 (!%p266_p10), %s1307_s14, 3  ;;  %s1316_s2 = sld [smem:[#allocation9_spill]] (!%p266_p10) }
  0x17   : > { %s312_s14 = scalar_lea.vmem (!%p266_p10), [#allocation3], %s1206_s15  ;;  %p849_p0 = scmp.ne.s32.totalorder (!%p266_p10), %s1076_s24, 0 }
  0x18   : > { %v1094_v0 = vmov 0.0   ;;  %s1209_s16 = scalar_select %p317_p12, %s1076_s24, 7  ;;  %vm1095_vm0 = vmmov 0   ;;  %vm363_vm1 = vcmask 261120   ;;  %vm514_vm2 = vcmask 31744  }
  0x19   : > { %882 = vmatprep.subr.bf16.mxu1 %v1094_v0  ;;  %874 = vmatprep.subr.bf16.mxu0 %v1094_v0  ;;  %s314_s12 = scalar_select %p313_p13, %s1080_s25, 1  ;;  %vm561_vm3 = vcmask 64512   ;;  %vm575_vm4 = vcmask 1043456   ;;  %vm625_vm5 = vcmask 1041408  }
  0x1a   : > { %886 = vmatprep.mubr.msk.bf16.mxu1 %vm1095_vm0, %v1094_v0  ;;  %878 = vmatprep.mubr.msk.bf16.mxu0 %vm1095_vm0, %v1094_v0  ;;  %s856_s17 = sshll.u32 %s1209_s16, 4 }
  0x1b   : > { %s321_s11 = scalar_lea.vmem %s1301_s1, %s856_s17  ;;  %s331_s7 = scalar_lea.vmem %s1303_s3, %s856_s17 }
  0x1c   : > { %s326_s20 = scalar_lea.vmem %s1316_s2, %s856_s17  ;;  %v991_v2 = vld [vmem:[%s321_s11 + $0x8] sm:$0xff]   ;;  %v993_v4 = vld [vmem:[%s321_s11] sm:$0xff]   ;;  %s829_s27 = sshll.u32 %s314_s12, 2 }
  0x1d   : > { %v990_v1 = vld [vmem:[%s326_s20 + $0x8] sm:$0xff]   ;;  %v992_v3 = vld [vmem:[%s326_s20] sm:$0xff]   ;;  %875 = vmatpush3.bf16.msra.mxu0 %v991_v2  ;;  %s316_s2 = scalar_lea.vmem %s1300_s0, %s829_s27 }
  0x1e   : > { %883 = vmatpush3.bf16.msra.mxu1 %v990_v1  ;;  %876 = vmatprep.subr.bf16.mxu0 %v1094_v0  ;;  %v337_v5 = vld [vmem:[%s316_s2] sm:$0xf]  ;;  %v994_v6 = vld [vmem:[%s331_s7 + $0x8] sm:$0xff]   ;;  %s836_s2 = sshll.u32 %s1209_s16, 1 }
  0x1f   : > { %884 = vmatprep.subr.bf16.mxu1 %v1094_v0  ;;  %v995_v7 = vld [vmem:[%s331_s7] sm:$0xff]   ;;  %s335_s8 = scalar_lea.vmem %s1304_s4, %s836_s2 }
  0x20   : > { %v350_v36 = vld [vmem:[%s335_s8] sm:$0x3] }
  0x21   : > { %877 = vmatpush3.bf16.msra.mxu0 %v993_v4  ;;  %v627_v37 = vsel %vm625_vm5, %v350_v36, 0 }
  0x22   : > { %885 = vmatpush3.bf16.msra.mxu1 %v992_v3  ;;  %890 = vmatprep.subr.bf16.mxu0 %v1094_v0 }
  0x23   : > { %898 = vmatprep.subr.bf16.mxu1 %v1094_v0 }
  0x24   : > { %879 = vmatmul.mubr.msk.bf16.vlgmr.msra.gmra.mxu0 %vm363_vm1, %v337_v5 }
  0x25   : > { %887 = vmatmul.mubr.msk.bf16.vlgmr.msra.gmra.mxu1 %vm363_vm1, %v337_v5  ;;  %894 = vmatprep.mubr.msk.bf16.mxu0 %vm1095_vm0, %v1094_v0 }
  0x26   : > { %900 = vmatprep.mubr.msk.bf16.mxu1 %vm1095_vm0, %v1094_v0  ;;  %891 = vmatpush3.bf16.msra.mxu0 %v994_v6 }
  0x27   : > { %892 = vmatprep.subr.bf16.mxu0 %v1094_v0 }
  0x2a   : > { %893 = vmatpush3.bf16.msra.mxu0 %v995_v7 }
  0x2b   : > { %904 = vmatprep.subr.bf16.mxu0 %v1094_v0 }
  0x2d   : > { %895 = vmatmul.mubr.msk.bf16.vlgmr.msra.gmra.mxu0 %vm363_vm1, %v337_v5 }
  0x2e   : > { %906 = vmatprep.mubr.msk.bf16.mxu0 %vm1095_vm0, %v1094_v0 }
  0xe4   : > { %v401_v10 = vpop.f32.mrf.mxu0 }
  0xe5   : > { %v454_v8 = vpop.f32.mrf.mxu1  ;;  %v407_v17 = vpack.c.bf16 %v401_v10, %v401_v10 }
  0xe6   : > { %v460_v9 = vpack.c.bf16 %v454_v8, %v454_v8  ;;  %v880_v13 = vpop.f32.mrf.mxu0 }
  0xe7   : > { %v888_v11 = vpop.f32.mrf.mxu1 }
  0xe8   : > { %v519_v12 = vsel %vm514_vm2, %v460_v9, 0  ;;  %v404_v15 = vpop.f32.mrf.mxu0 }
  0xe9   : > { %v457_v14 = vpop.f32.mrf.mxu1  ;;  %899 = vmatpush3.bf16.xpose.msra.mxu1 %v519_v12 }
  0xea   : > { %910 = vmatprep.subr.bf16.mxu1 %v1094_v0  ;;  %v881_v18 = vpop.f32.mrf.mxu0 }
  0xeb   : > { %v889_v16 = vpop.f32.mrf.mxu1 }
  0xed   : > { %v507_v24 = vpop.f32.mrf.mxu0 }
  0xee   : > { %v513_v25 = vpack.c.bf16 %v507_v24, %v507_v24 }
  0xef   : > { %v896_v26 = vpop.f32.mrf.mxu0 }
  0xf0   : > { %901 = vmatmul.mubr.msk.bf16.vlgmr.msra.gmra.mxu1 %vm514_vm2, %v407_v17  ;;  %v577_v27 = vsel %vm575_vm4, %v513_v25, 0 }
  0xf1   : > { %912 = vmatprep.mubr.msk.bf16.mxu1 %vm1095_vm0, %v1094_v0  ;;  %v510_v28 = vpop.f32.mrf.mxu0  ;;  %905 = vmatpush3.bf16.msra.mxu0 %v577_v27 }
  0xf2   : > { %911 = vmatpush3.bf16.msra.mxu1 %v627_v37 }
  0xf3   : > { %v897_v29 = vpop.f32.mrf.mxu0 }
 0x1b0   : > { %v555_v19 = vpop.f32.mrf.mxu1 }
 0x1b1   : > { %v562_v20 = vsel %vm561_vm3, %v555_v19, -inf }
 0x1b2   : > { %563 = vmax.xlane.f32.xlu0 %v562_v20  ;;  %v902_v21 = vpop.f32.mrf.mxu1 }
 0x1b4   : > { %v558_v22 = vpop.f32.mrf.mxu1 }
 0x1b6   : > { %v903_v23 = vpop.f32.mrf.mxu1 }
 0x23b   : > { %v564_v30 = vpop.xlane.xlu0 %563 }
 0x23c   : > { %v565_v31 = vsub.f32 %v555_v19, %v564_v30 }
 0x23e   : > { %v566_v32 = vmul.f32 1.442695, %v565_v31 }
 0x240   : > { %996 = vpow2.f32 %v566_v32 }
 0x24d   : > { %v997_v33 = vpop.eup %996 }
 0x24e   : > { %v568_v34 = vsel %vm561_vm3, %v997_v33, 0.0  ;;  %v571_v35 = vpack.c.bf16 %v997_v33, %v997_v33 }
 0x24f   : > { %569 = vadd.xlane.f32.xlu0 %v568_v34 }
 0x250   : > { %907 = vmatmul.mubr.msk.bf16.vlgmr.msra.gmra.mxu0 %vm561_vm3, %v571_v35 }
 0x2d8   : > { %v570_v38 = vpop.xlane.xlu0 %569 }
 0x2d9   : > { %998 = vrcp.f32 %v570_v38 }
 0x2e6   : > { %v999_v39 = vpop.eup %998 }
 0x310   : > { %v613_v40 = vpop.f32.mrf.mxu0 }
 0x311   : > { %v620_v41 = vmul.f32 %v999_v39, %v613_v40 }
 0x312   : > { %v908_v42 = vpop.f32.mrf.mxu0 }
 0x313   : > { %v621_v43 = vpack.c.bf16 %v620_v41, %v620_v41 }
 0x314   : > { %v616_v44 = vpop.f32.mrf.mxu0 }
 0x315   : > { %913 = vmatmul.mubr.msk.bf16.vlgmr.msra.gmra.mxu1 %vm514_vm2, %v621_v43 }
 0x316   : > { %v909_v45 = vpop.f32.mrf.mxu0 }
 0x3d5   : > { %v663_v46 = vpop.f32.mrf.mxu1 }
 0x3d7   : > { %v914_v47 = vpop.f32.mrf.mxu1  ;;  %672 = sbr.rel (%p849_p0) target bundleno = 990 (0x3de), region = 48 }
 0x3d9   : > { %v666_v48 = vpop.f32.mrf.mxu1 }
 0x3db   : > { %v915_v49 = vpop.f32.mrf.mxu1 }
 0x3dc   : > { %v1096_v50 = vmov 0.0  }
 0x3dd   : > { %673 = vst.msk [vmem:[#allocation2] sm:$0xff] %vm363_vm1, %v1096_v50 }
 0x3de PF: > { %p850_p1 = scmp.ne.s32.totalorder %s1076_s24, 7 }
 0x3e3   : > { %680 = sbr.rel (%p850_p1) target bundleno = 1010 (0x3f2), region = 52 }
 0x3e4   : > { %v674_v51 = vld [vmem:[#allocation2] sm:$0xff] }
 0x3e5   : > { %v675_v52 = vadd.f32 %v674_v51, %v663_v46 }
 0x3e7   : > { %676 = vst.msk [vmem:[#allocation2] sm:$0xff] %vm363_vm1, %v675_v52 }
 0x3e8   : > { %v851_v54 = vld [vmem:[%s1305_s5] ss:$0 sm:$0xff] }
 0x3ee   : > { %v681_v53 = vld [vmem:[#allocation2] sm:$0xff] }
 0x3ef   : > { %v689_v55 = vadd.f32 %v851_v54, %v681_v53 }
 0x3f1   : > { %690 = vst.msk [vmem:[%s312_s14] sm:$0xff] %vm363_vm1, %v689_v55 }
 0x3f2 PF: > { %s853_s15 = sshll.u32 %s1080_s25, 7  ;;  %s705_s11 = sshll.u32 %s312_s14, 4  ;;  %s706_s11 = int_to_ptr.vmem [resolvable:$true] %s705_s11 }
 0x3f3   : > { %s703_s30 = scalar_lea.hbm %s1306_s6, %s853_s15  ;;  %s1317_s24 = sand.u32 1, %s1068_s22  }
 0x3f4   : > { %s692_s12 = scalar_lea.sflag [#allocation4], %s1317_s24  ;;  %s1000_s18 = scalar_lea.vmem %s706_s11, 128 }
 0x3f5   : > { %p1001_p2 = scmp.ne.s32.totalorder %s706_s11, %s1000_s18  ;;  %s1097_s19 = smov [#allocation3]  }
 0x3f6   : > { %s1004_s2 = sshll.u32 %s1097_s19, 4  ;;  %s1005_s2 = int_to_ptr.vmem [resolvable:$false] %s1004_s2 }
 0x3f7   : > { %p1002_p4 = pnand %p1001_p2, %p1182_p3  ;;  %s1006_s27 = scalar_lea.vmem %s1005_s2, 256 }
 0x3f8   : > { %p1007_p6 = scmp.lt.s32.totalorder %s706_s11, %s1005_s2  ;;  %p1008_p7 = scmp.lt.s32.totalorder %s1006_s27, %s1000_s18 }
 0x3f9   : > { %p1003_p5 = pneg %p1002_p4 }
 0x3fa   : > { %p1009_p8 = por %p1008_p7, %p1007_p6 }
 0x3fc   : > { %p1010_p10 = pnand %p1009_p8, %p1003_p5 }
 0x3fe   : > { %1013 = shalt.err (!%p1010_p10)
}
 0x3ff   : > { %s1014_s25 = scalar_lea.hbm %s703_s30, 128  ;;  %s1018_s14 = scalar_lea.hbm %s1306_s6, 256 }
 0x400   : > { %p1015_p11 = scmp.ne.s32.totalorder %s703_s30, %s1014_s25  ;;  %p1019_p0 = scmp.lt.s32.totalorder %s703_s30, %s1306_s6 }
 0x401   : > { %p1020_p1 = scmp.lt.s32.totalorder %s1018_s14, %s1014_s25 }
 0x402   : > { %p1016_p12 = pnand %p1015_p11, %p1182_p3 }
 0x403   : > { %p1021_p2 = por %p1020_p1, %p1019_p0 }
 0x404   : > { %p1017_p13 = pneg %p1016_p12 }
 0x406   : > { %p1022_p4 = pnand %p1021_p2, %p1017_p13 }
 0x408   : > { %1025 = shalt.err (!%p1022_p4)
}
 0x409   : > { %916 = dma.vmem_to_hbm [thread:$0]  (%p1182_p3), %s706_s11, 128, %s703_s30, %s692_s12  }
 0x40a PF: > { %p922_p5 = scmp.ge.s32.totalorder %s1092_s28, 2  ;;  %s717_s15 = sand.u32 1, %s1064_s21  }
 0x40b   : > { %s718_s20 = scalar_lea.sflag [#allocation4], %s717_s15 }
 0x40c   : > { %p919_p6 = pnand %p922_p5, %p1192_p9 }
 0x40e   : > { %p920_p7 = pneg %p919_p6 }
 0x410   : > { %1059 = dma.done.wait (%p920_p7), %s718_s20, 128  }
 0x411   : > { %1061 = vsyncadd (%p920_p7), %s718_s20, 4294967168  ;;  %s19_s28 = sadd.s32 1, %s1092_s28   ;;  %s1318_s25 = sld [smem:[#allocation6_spill]] }
 0x412   : > { %p16_p8 = scmp.ge.s32.totalorder %s19_s28, 18   ;;  %s1319_s9 = sld [smem:[#allocation7_spill]] }
 0x413   : > { %s1320_s27 = sld [smem:[#allocation8_spill]]  ;;  %s1321_s21 = smov %s1068_s22 }
 0x414   : > { %s1322_s22 = smov %s1072_s23  ;;  %s1323_s23 = smov %s1200_s13 }
 0x415   : > { %s1324_s24 = smov %s1084_s26  ;;  %18 = sbr.rel (!%p16_p8) target bundleno = 7 (0x7), region = 99 }
 0x418   : > { %s1325_s26 = smov %s1319_s9 }
 0x41a   :  { %723 = vsyncpa [#allocation4], 1 }
 0x41b   :  { %725 = vsyncpa [#allocation4 + $0x1], 1 }

</bundles_post_ra>
